<compile_context>
chip_gen: v7x
topology: tpu7x:2x2x1
jax: 0.10.0
libtpu: 0.0.40
codegen_flags: <defaults>
</compile_context>

<pallas_src>
import functools

import jax
import jax.numpy as jnp
from jax.experimental import pallas as pl
from jax.experimental.pallas import tpu as pltpu


def _attention_kernel(x_ref, wqkv_ref, bqkv_ref, wout_ref, bout_ref, o_ref,
                      *, n_heads: int, d_k: int):
    # x_ref:    (S, C)        f32   one batch element
    # wqkv_ref: (C, 3*H*d_k)  bf16  torch column order; 1/sqrt(d_k) folded into q cols
    # bqkv_ref: (1, 3*H*d_k)  f32   scale folded into q part
    # wout_ref: (H*d_k, C)    bf16
    # bout_ref: (1, C)        f32
    # o_ref:    (S, C) f32  or lane-dense (S*C//128, 128) f32
    seq, n_ch = x_ref.shape

    x = x_ref[...]                                     # f32 — kept for the residual
    xb = x.astype(jnp.bfloat16)

    # --- single QKV projection (N = 3*H*d_k columns); bias add in f32 ---
    qkv = jnp.dot(xb, wqkv_ref[...], preferred_element_type=jnp.float32)
    qkv = (qkv + bqkv_ref[...]).astype(jnp.bfloat16)   # (S, 3*H*d_k)

    # --- attention per head (static unroll; H is small) ---
    res_heads = []
    for h in range(n_heads):
        base = 3 * d_k * h                             # torch layout: [q|k|v] per head
        qh = qkv[:, base:base + d_k]                   # (S, d_k) — scale pre-folded
        kh = qkv[:, base + d_k:base + 2 * d_k]
        vh = qkv[:, base + 2 * d_k:base + 3 * d_k]

        # logits = q @ k^T : contract d_k of both operands directly (no explicit .T).
        logits = jax.lax.dot_general(qh, kh, (((1,), (1,)), ((), ())),
                                     preferred_element_type=jnp.float32)   # (S, S)
        m = jnp.max(logits, axis=-1, keepdims=True)
        p = jnp.exp(logits - m)                        # unnormalized, f32
        denom = jnp.sum(p, axis=-1, keepdims=True)     # (S, 1)

        # PV with unnormalized p; normalize the (S, d_k) result, not the (S, S) probs.
        res_h = jnp.dot(p.astype(jnp.bfloat16), vh,
                        preferred_element_type=jnp.float32)                # (S, d_k)
        res_h = res_h * pl.reciprocal(denom, approx=True)
        res_heads.append(res_h.astype(jnp.bfloat16))

    # --- head concat (lane concat) folded into ONE output matmul ---
    res = res_heads[0] if n_heads == 1 else jnp.concatenate(res_heads, axis=-1)
    out = jnp.dot(res, wout_ref[...], preferred_element_type=jnp.float32)
    out = out + bout_ref[...] + x                      # (S, C) f32

    if o_ref.shape == out.shape:
        o_ref[...] = out.astype(o_ref.dtype)
    else:
        # Lane-dense store: pack `npack` consecutive row-blocks side by side so the
        # write is an unmasked 128-lane store (sublane slices + lane concat only).
        npack = o_ref.shape[-1] // n_ch
        rows = seq // npack
        o_ref[...] = jnp.concatenate(
            [out[j * rows:(j + 1) * rows, :] for j in range(npack)],
            axis=-1).astype(o_ref.dtype)


def pack_params(w_qkv, b_qkv, w_out, b_out, *, n_heads: int, d_k: int):
    """One-time parameter repack (kept OUTSIDE the jitted per-call path).

    w_qkv: (C, 3*n_heads*d_k) in math layout (y = x @ w_qkv + b_qkv), torch column
           order (head-major, [q|k|v] contiguous per head).  For a real PyTorch
           checkpoint pass `projection.weight.T` / `output.weight.T`.
    """
    scale = float(d_k) ** (-0.5)
    w_qkv = jnp.asarray(w_qkv, jnp.float32)
    b_qkv = jnp.asarray(b_qkv, jnp.float32)
    # Fold 1/sqrt(d_k) into the q columns (weight AND bias) so the kernel never
    # touches the (S, S) logits with a scale multiply.
    col_scale = jnp.tile(
        jnp.concatenate([jnp.full((d_k,), scale, jnp.float32),
                         jnp.ones((2 * d_k,), jnp.float32)]), n_heads)
    w_qkv_p = (w_qkv * col_scale[None, :]).astype(jnp.bfloat16)      # (C, 3*H*dk)
    b_qkv_p = (b_qkv * col_scale).reshape(1, -1).astype(jnp.float32)  # (1, 3*H*dk)
    w_out_p = jnp.asarray(w_out).astype(jnp.bfloat16)                 # (H*dk, C)
    b_out_p = jnp.asarray(b_out, jnp.float32).reshape(1, -1)          # (1, C)
    return w_qkv_p, b_qkv_p, w_out_p, b_out_p


@functools.partial(jax.jit, static_argnames=("n_heads", "d_k"))
def attention_block(x, w_qkv_p, b_qkv_p, w_out_p, b_out_p, *, n_heads: int, d_k: int):
    """x: (B, C, H, W, D) float32. Params are pre-packed by pack_params."""
    B, C, H, W, D = x.shape
    S = H * W * D
    hd = n_heads * d_k

    # Glue required by the module: NC(HWD) -> (B, S, C).
    x_sc = jnp.transpose(x.reshape(B, C, S), (0, 2, 1))

    # Lane-dense output layout whenever (S, C) tiles evenly into 128-wide rows.
    lane_dense = (C < 128) and (128 % C == 0) and (S % (128 // C) == 0)
    if lane_dense:
        npack = 128 // C
        rows = S // npack
        out_shape = jax.ShapeDtypeStruct((B, rows, 128), x.dtype)
        out_spec = pl.BlockSpec((None, rows, 128), lambda b: (b, 0, 0))
    else:
        out_shape = jax.ShapeDtypeStruct((B, S, C), x.dtype)
        out_spec = pl.BlockSpec((None, S, C), lambda b: (b, 0, 0))

    kernel = functools.partial(_attention_kernel, n_heads=n_heads, d_k=d_k)

    out = pl.pallas_call(
        kernel,
        out_shape=out_shape,
        grid=(B,),
        in_specs=[
            pl.BlockSpec((None, S, C), lambda b: (b, 0, 0)),   # x: per-batch block
            pl.BlockSpec((C, 3 * hd), lambda b: (0, 0)),       # w_qkv (shared)
            pl.BlockSpec((1, 3 * hd), lambda b: (0, 0)),       # b_qkv
            pl.BlockSpec((hd, C), lambda b: (0, 0)),           # w_out
            pl.BlockSpec((1, C), lambda b: (0, 0)),            # b_out
        ],
        out_specs=out_spec,
        compiler_params=pltpu.CompilerParams(
            dimension_semantics=("parallel",)),                # v7x: 2 TCs split batch
    )(x_sc, w_qkv_p, b_qkv_p, w_out_p, b_out_p)

    if lane_dense:
        # Undo the in-kernel lane packing: (B, rows, npack*C) -> (B, S, C).
        out = out.reshape(B, rows, npack, C).transpose(0, 2, 1, 3).reshape(B, S, C)
    # Glue: (B, S, C) -> (B, C, H, W, D).
    return jnp.transpose(out, (0, 2, 1)).reshape(B, C, H, W, D)


def attention_block_ref(x, w_qkv, b_qkv, w_out, b_out, *, n_heads: int, d_k: int):
    """Pure-jnp f32 reference mirroring the PyTorch forward (unpacked params)."""
    B, C, H, W, D = x.shape
    S = H * W * D
    scale = float(d_k) ** (-0.5)
    xs = jnp.transpose(x.reshape(B, C, S), (0, 2, 1))              # (B, S, C)
    qkv = (xs @ w_qkv + b_qkv).reshape(B, S, n_heads, 3 * d_k)
    q, k, v = jnp.split(qkv, 3, axis=-1)
    attn = jnp.einsum('bihd,bjhd->bijh', q, k) * scale
    attn = jax.nn.softmax(attn, axis=2)
    res = jnp.einsum('bijh,bjhd->bihd', attn, v).reshape(B, S, n_heads * d_k)
    res = res @ w_out + b_out + xs
    return jnp.transpose(res, (0, 2, 1)).reshape(B, C, H, W, D)


if __name__ == "__main__":
    # Module config: n_channels=32, n_heads=2, d_k=16 (GroupNorm built but unused).
    B, C = 2, 32
    H, W, D = 4, 4, 4
    n_heads, d_k = 2, 16

    key = jax.random.PRNGKey(0)
    kx, k1, k2, k3, k4 = jax.random.split(key, 5)

    x = jax.random.normal(kx, (B, C, H, W, D), dtype=jnp.float32)

    # Deterministic synthetic parameters (shapes from the nn.Linear definitions).
    w_qkv = jax.random.normal(k1, (C, 3 * n_heads * d_k), dtype=jnp.float32) * 0.05
    b_qkv = jax.random.normal(k2, (3 * n_heads * d_k,), dtype=jnp.float32) * 0.01
    w_out = jax.random.normal(k3, (n_heads * d_k, C), dtype=jnp.float32) * 0.05
    b_out = jax.random.normal(k4, (C,), dtype=jnp.float32) * 0.01

    packed = pack_params(w_qkv, b_qkv, w_out, b_out, n_heads=n_heads, d_k=d_k)

    out = attention_block(x, *packed, n_heads=n_heads, d_k=d_k)
    out = jax.block_until_ready(out)

    ref = attention_block_ref(x, w_qkv, b_qkv, w_out, b_out, n_heads=n_heads, d_k=d_k)
    assert out.shape == (B, C, H, W, D)
    # bf16 MXU operands + approx EUP reciprocal in softmax -> relaxed tolerance.
    assert jnp.allclose(out, ref, atol=2e-2, rtol=2e-2), "mismatch vs reference"

    print("KERNEL_OK")
</pallas_src>

<mosaic_0001>
module attributes {stable_mosaic.version = 11 : i64} {
  func.func @_attention_kernel(%arg0: i32, %arg1: memref<1x64x32xf32, #tpu.memory_space<vmem>>, %arg2: memref<32x96xbf16, #tpu.memory_space<vmem>>, %arg3: memref<1x96xf32, #tpu.memory_space<vmem>>, %arg4: memref<32x32xbf16, #tpu.memory_space<vmem>>, %arg5: memref<1x32xf32, #tpu.memory_space<vmem>>, %arg6: memref<1x16x128xf32, #tpu.memory_space<vmem>>) attributes {dimension_semantics = [#tpu.dimension_semantics<parallel>], iteration_bounds = array<i64: 2>, scalar_prefetch = 0 : i64, scratch_operands = 0 : i64, tpu.core_type = #tpu.core_type<tc>, window_params = [{transform_indices = @transform_0, window_bounds = array<i64: 1, 64, 32>}, {pipeline_mode = #tpu.pipeline_mode<synchronous>, transform_indices = @transform_1, window_bounds = array<i64: 32, 96>}, {pipeline_mode = #tpu.pipeline_mode<synchronous>, transform_indices = @transform_2, window_bounds = array<i64: 1, 96>}, {pipeline_mode = #tpu.pipeline_mode<synchronous>, transform_indices = @transform_3, window_bounds = array<i64: 32, 32>}, {pipeline_mode = #tpu.pipeline_mode<synchronous>, transform_indices = @transform_4, window_bounds = array<i64: 1, 32>}, {transform_indices = @transform_5, window_bounds = array<i64: 1, 16, 128>}]} {
    %c0 = arith.constant 0 : index
    %c0_0 = arith.constant 0 : index
    %c0_1 = arith.constant 0 : index
    %0 = vector.load %arg1[%c0, %c0_0, %c0_1] : memref<1x64x32xf32, #tpu.memory_space<vmem>>, vector<1x64x32xf32>
    %1 = vector.shape_cast %0 : vector<1x64x32xf32> to vector<64x32xf32>
    %2 = arith.truncf %1 : vector<64x32xf32> to vector<64x32xbf16>
    %c0_2 = arith.constant 0 : index
    %c0_3 = arith.constant 0 : index
    %3 = vector.load %arg2[%c0_2, %c0_3] : memref<32x96xbf16, #tpu.memory_space<vmem>>, vector<32x96xbf16>
    %cst = arith.constant dense<0.000000e+00> : vector<64x96xf32>
    %4 = tpu.matmul %2, %3, %cst {dimension_numbers = #tpu.dot_dimension_numbers<[1], [0], [0], [1], [0, 0, 1, 1], [], []>} : vector<64x32xbf16>, vector<32x96xbf16>, vector<64x96xf32> -> vector<64x96xf32>
    %c0_4 = arith.constant 0 : index
    %c0_5 = arith.constant 0 : index
    %5 = vector.load %arg3[%c0_4, %c0_5] : memref<1x96xf32, #tpu.memory_space<vmem>>, vector<1x96xf32>
    %6 = vector.broadcast %5 : vector<1x96xf32> to vector<64x96xf32>
    %7 = arith.addf %4, %6 : vector<64x96xf32>
    %8 = arith.truncf %7 : vector<64x96xf32> to vector<64x96xbf16>
    %9 = vector.extract_strided_slice %8 {offsets = [0, 0], sizes = [64, 16], strides = [1, 1]} : vector<64x96xbf16> to vector<64x16xbf16>
    %10 = vector.extract_strided_slice %8 {offsets = [0, 16], sizes = [64, 16], strides = [1, 1]} : vector<64x96xbf16> to vector<64x16xbf16>
    %11 = vector.extract_strided_slice %8 {offsets = [0, 32], sizes = [64, 16], strides = [1, 1]} : vector<64x96xbf16> to vector<64x16xbf16>
    %cst_6 = arith.constant dense<0.000000e+00> : vector<64x64xf32>
    %12 = tpu.matmul %9, %10, %cst_6 {dimension_numbers = #tpu.dot_dimension_numbers<[1], [1], [0], [0], [0, 0, 1, 0], [], []>} : vector<64x16xbf16>, vector<64x16xbf16>, vector<64x64xf32> -> vector<64x64xf32>
    %cst_7 = arith.constant dense<0xFF800000> : vector<64xf32>
    %13 = vector.multi_reduction <maximumf>, %12, %cst_7 [1] : vector<64x64xf32> to vector<64xf32>
    %14 = vector.shape_cast %13 : vector<64xf32> to vector<64x1xf32>
    %15 = vector.broadcast %14 : vector<64x1xf32> to vector<64x64xf32>
    %16 = arith.subf %12, %15 : vector<64x64xf32>
    %17 = math.exp %16 : vector<64x64xf32>
    %cst_8 = arith.constant dense<0.000000e+00> : vector<64xf32>
    %18 = vector.multi_reduction <add>, %17, %cst_8 [1] : vector<64x64xf32> to vector<64xf32>
    %19 = vector.shape_cast %18 : vector<64xf32> to vector<64x1xf32>
    %20 = arith.truncf %17 : vector<64x64xf32> to vector<64x64xbf16>
    %cst_9 = arith.constant dense<0.000000e+00> : vector<64x16xf32>
    %21 = tpu.matmul %20, %11, %cst_9 {dimension_numbers = #tpu.dot_dimension_numbers<[1], [0], [0], [1], [0, 0, 1, 1], [], []>} : vector<64x64xbf16>, vector<64x16xbf16>, vector<64x16xf32> -> vector<64x16xf32>
    %22 = tpu.reciprocal %19 {approx = true} : vector<64x1xf32> -> vector<64x1xf32>
    %23 = vector.broadcast %22 : vector<64x1xf32> to vector<64x16xf32>
    %24 = arith.mulf %21, %23 : vector<64x16xf32>
    %25 = arith.truncf %24 : vector<64x16xf32> to vector<64x16xbf16>
    %26 = vector.extract_strided_slice %8 {offsets = [0, 48], sizes = [64, 16], strides = [1, 1]} : vector<64x96xbf16> to vector<64x16xbf16>
    %27 = vector.extract_strided_slice %8 {offsets = [0, 64], sizes = [64, 16], strides = [1, 1]} : vector<64x96xbf16> to vector<64x16xbf16>
    %28 = vector.extract_strided_slice %8 {offsets = [0, 80], sizes = [64, 16], strides = [1, 1]} : vector<64x96xbf16> to vector<64x16xbf16>
    %cst_10 = arith.constant dense<0.000000e+00> : vector<64x64xf32>
    %29 = tpu.matmul %26, %27, %cst_10 {dimension_numbers = #tpu.dot_dimension_numbers<[1], [1], [0], [0], [0, 0, 1, 0], [], []>} : vector<64x16xbf16>, vector<64x16xbf16>, vector<64x64xf32> -> vector<64x64xf32>
    %cst_11 = arith.constant dense<0xFF800000> : vector<64xf32>
    %30 = vector.multi_reduction <maximumf>, %29, %cst_11 [1] : vector<64x64xf32> to vector<64xf32>
    %31 = vector.shape_cast %30 : vector<64xf32> to vector<64x1xf32>
    %32 = vector.broadcast %31 : vector<64x1xf32> to vector<64x64xf32>
    %33 = arith.subf %29, %32 : vector<64x64xf32>
    %34 = math.exp %33 : vector<64x64xf32>
    %cst_12 = arith.constant dense<0.000000e+00> : vector<64xf32>
    %35 = vector.multi_reduction <add>, %34, %cst_12 [1] : vector<64x64xf32> to vector<64xf32>
    %36 = vector.shape_cast %35 : vector<64xf32> to vector<64x1xf32>
    %37 = arith.truncf %34 : vector<64x64xf32> to vector<64x64xbf16>
    %cst_13 = arith.constant dense<0.000000e+00> : vector<64x16xf32>
    %38 = tpu.matmul %37, %28, %cst_13 {dimension_numbers = #tpu.dot_dimension_numbers<[1], [0], [0], [1], [0, 0, 1, 1], [], []>} : vector<64x64xbf16>, vector<64x16xbf16>, vector<64x16xf32> -> vector<64x16xf32>
    %39 = tpu.reciprocal %36 {approx = true} : vector<64x1xf32> -> vector<64x1xf32>
    %40 = vector.broadcast %39 : vector<64x1xf32> to vector<64x16xf32>
    %41 = arith.mulf %38, %40 : vector<64x16xf32>
    %42 = arith.truncf %41 : vector<64x16xf32> to vector<64x16xbf16>
    %43 = tpu.concatenate %25, %42 in 1 : vector<64x16xbf16>, vector<64x16xbf16> -> vector<64x32xbf16>
    %c0_14 = arith.constant 0 : index
    %c0_15 = arith.constant 0 : index
    %44 = vector.load %arg4[%c0_14, %c0_15] : memref<32x32xbf16, #tpu.memory_space<vmem>>, vector<32x32xbf16>
    %cst_16 = arith.constant dense<0.000000e+00> : vector<64x32xf32>
    %45 = tpu.matmul %43, %44, %cst_16 {dimension_numbers = #tpu.dot_dimension_numbers<[1], [0], [0], [1], [0, 0, 1, 1], [], []>} : vector<64x32xbf16>, vector<32x32xbf16>, vector<64x32xf32> -> vector<64x32xf32>
    %c0_17 = arith.constant 0 : index
    %c0_18 = arith.constant 0 : index
    %46 = vector.load %arg5[%c0_17, %c0_18] : memref<1x32xf32, #tpu.memory_space<vmem>>, vector<1x32xf32>
    %47 = vector.broadcast %46 : vector<1x32xf32> to vector<64x32xf32>
    %48 = arith.addf %45, %47 : vector<64x32xf32>
    %49 = arith.addf %48, %1 : vector<64x32xf32>
    %50 = vector.extract_strided_slice %49 {offsets = [0, 0], sizes = [16, 32], strides = [1, 1]} : vector<64x32xf32> to vector<16x32xf32>
    %51 = vector.extract_strided_slice %49 {offsets = [16, 0], sizes = [16, 32], strides = [1, 1]} : vector<64x32xf32> to vector<16x32xf32>
    %52 = vector.extract_strided_slice %49 {offsets = [32, 0], sizes = [16, 32], strides = [1, 1]} : vector<64x32xf32> to vector<16x32xf32>
    %53 = vector.extract_strided_slice %49 {offsets = [48, 0], sizes = [16, 32], strides = [1, 1]} : vector<64x32xf32> to vector<16x32xf32>
    %54 = tpu.concatenate %50, %51, %52, %53 in 1 : vector<16x32xf32>, vector<16x32xf32>, vector<16x32xf32>, vector<16x32xf32> -> vector<16x128xf32>
    %c0_19 = arith.constant 0 : index
    %c0_20 = arith.constant 0 : index
    %c0_21 = arith.constant 0 : index
    %55 = vector.load %arg6[%c0_19, %c0_20, %c0_21] : memref<1x16x128xf32, #tpu.memory_space<vmem>>, vector<1x16x128xf32>
    %56 = vector.shape_cast %55 : vector<1x16x128xf32> to vector<16x128xf32>
    %57 = vector.shape_cast %54 : vector<16x128xf32> to vector<1x16x128xf32>
    tpu.vector_store %arg6[%c0_19, %c0_20, %c0_21], %57 {strides = array<i32>} : memref<1x16x128xf32, #tpu.memory_space<vmem>>, vector<1x16x128xf32>,
    return
  }
  func.func @transform_0(%arg0: i32) -> (i32, i32, i32) {
    %c0_i32 = arith.constant 0 : i32
    %c0_i32_0 = arith.constant 0 : i32
    %c0_i32_1 = arith.constant 0 : i32
    return %arg0, %c0_i32, %c0_i32_0 : i32, i32, i32
  }
  func.func @transform_1(%arg0: i32) -> (i32, i32) {
    %c0_i32 = arith.constant 0 : i32
    %c0_i32_0 = arith.constant 0 : i32
    %c0_i32_1 = arith.constant 0 : i32
    return %c0_i32, %c0_i32_0 : i32, i32
  }
  func.func @transform_2(%arg0: i32) -> (i32, i32) {
    %c0_i32 = arith.constant 0 : i32
    %c0_i32_0 = arith.constant 0 : i32
    %c0_i32_1 = arith.constant 0 : i32
    return %c0_i32, %c0_i32_0 : i32, i32
  }
  func.func @transform_3(%arg0: i32) -> (i32, i32) {
    %c0_i32 = arith.constant 0 : i32
    %c0_i32_0 = arith.constant 0 : i32
    %c0_i32_1 = arith.constant 0 : i32
    return %c0_i32, %c0_i32_0 : i32, i32
  }
  func.func @transform_4(%arg0: i32) -> (i32, i32) {
    %c0_i32 = arith.constant 0 : i32
    %c0_i32_0 = arith.constant 0 : i32
    %c0_i32_1 = arith.constant 0 : i32
    return %c0_i32, %c0_i32_0 : i32, i32
  }
  func.func @transform_5(%arg0: i32) -> (i32, i32, i32) {
    %c0_i32 = arith.constant 0 : i32
    %c0_i32_0 = arith.constant 0 : i32
    %c0_i32_1 = arith.constant 0 : i32
    return %arg0, %c0_i32, %c0_i32_0 : i32, i32, i32
  }
}

</mosaic_0001>

<bundles_post_ra>
// kernel: attention_block.1
= control target key start
LH: loop header
LB: loop body
LE: loop exit
PB: predicated region body
PF: predicated region fallthrough
CT: control target
= control target key end

     0   :  { %10 = vsyncpa [#allocation3], 0  ;;  %s2129_s0 = inlined_call_operand.hbm [shape: f32[2,64,32], index: 0, kind: input, shape index: {}]   ;;  %s2130_s1 = inlined_call_operand.hbm [shape: bf16[32,96], index: 1, kind: input, shape index: {}]   ;;  %s2131_s2 = inlined_call_operand.vmem [shape: f32[1,96], index: 2, kind: input, shape index: {}]   ;;  %s2132_s3 = inlined_call_operand.hbm [shape: bf16[32,32], index: 3, kind: input, shape index: {}]   ;;  %s2133_s4 = inlined_call_operand.vmem [shape: f32[1,32], index: 4, kind: input, shape index: {}]   ;;  %s2134_s5 = inlined_call_operand.vmem [shape: f32[2,16,128], index: 5, kind: output, shape index: {}]  }
   0x1   :  { %12 = vsyncpa [#allocation3 + $0x1], 0 }
   0x2   :  { %13 = vsyncpa [#allocation5], 0  ;;  %s1714_s18 = smov 0   ;;  %s1716_s19 = smov 0  }
   0x3   :  { %s1718_s20 = smov 0   ;;  %s1720_s21 = smov 0  }
   0x4 LB: > { %s1733_s22 = sadd.s32 4294967295, %s1668_s21   ;;  %p39_p0 = scmp.ne.s32.totalorder %s1660_s19, %s1656_s18  ;;  %s1668_s21 = sphi %s1720_s21, %s2149_s21   ;;  %s1664_s20 = sphi %s1718_s20, %s2148_s20   ;;  %s1660_s19 = sphi %s1716_s19, %s2147_s19   ;;  %s1656_s18 = sphi %s1714_s18, %s2146_s18  }
   0x5   : > { %p2135_p1 = scmp.eq.s32.totalorder %s1733_s22, 0  ;;  %p1218_p2 = scmp.ge.s32.totalorder %s1668_s21, 1 }
   0x6   : > { %p160_p3 = scmp.lt.s32.totalorder %s1668_s21, 3  ;;  %s1670_s25 = smov [#allocation4]  }
   0x7   : > { %p1741_p4 = por %p2135_p1, %p39_p0  ;;  %s172_s26 = sshll.u32 %s1670_s25, 4  ;;  %s173_s26 = int_to_ptr.vmem [resolvable:$true] %s172_s26 }
   0x8   : > { %p1745_p5 = pnand %p1218_p2, %p160_p3  ;;  %s1671_s28 = smov [#allocation6]  }
   0x9   : > { %s2138_s23 = scalar_select %p1741_p4, 1, 0 }
   0xa   : > { %s2139_s24 = scalar_select %p1745_p5, 1, 0 }
   0xb   : > { %p1415_p6 = pneg %p1745_p5  ;;  %s188_s29 = sshll.u32 %s1671_s28, 4  ;;  %s1757_s29 = int_to_ptr.vmem [resolvable:$true] %s188_s29 }
   0xc   : > { %s1544_s7 = scalar_lea.hbm %s2130_s1, 256 }
   0xd   : > { %p1753_p7 = pnand %p1415_p6, %p2135_p1  ;;  %p1545_p8 = scmp.ne.s32.totalorder %s2130_s1, %s1544_s7 }
   0xe   : > { %p1551_p12 = scmp.lt.u32.totalorder %s1544_s7, %s2130_s1 }
   0xf   : > { %p1546_p9 = pneg %p1753_p7 }
  0x11   : > { %p1547_p10 = pnand %p1546_p9, %p1545_p8 }
  0x13   : > { %p1548_p11 = pneg %p1547_p10 }
  0x15   : > { %p1553_p13 = pnand %p1551_p12, %p1548_p11 }
  0x17   : > { %1556 = shalt.err (!%p1553_p13)
}
  0x18   : > { %s1557_s12 = scalar_lea.vmem %s173_s26, 256  ;;  %p1565_p6 = scmp.lt.s32.totalorder %s173_s26, %s173_s26 }
  0x19   : > { %p1558_p0 = scmp.ne.s32.totalorder %s173_s26, %s1557_s12  ;;  %p1566_p1 = scmp.lt.s32.totalorder %s1557_s12, %s1557_s12 }
  0x1b   : > { %p1560_p2 = pnand %p1558_p0, %p1546_p9  ;;  %p1567_p4 = por %p1566_p1, %p1565_p6 }
  0x1d   : > { %p1561_p3 = pneg %p1560_p2 }
  0x1f   : > { %p1568_p5 = pnand %p1567_p4, %p1561_p3 }
  0x21   : > { %1571 = shalt.err (!%p1568_p5)
}
  0x22   : > { %s1672_s13 = smov 64   ;;  %s1673_s14 = smov 4  }
  0x23   : > { %1418 = dma.hbm_to_vmem [thread:$0]  (!%p1753_p7), %s2130_s1, 256, %s173_s26, [#allocation5], %s1672_s13, %s1672_s13, %s1673_s14  }
  0x24   : > { %s1572_s25 = scalar_lea.hbm %s2132_s3, 256 }
  0x25   : > { %p1573_p8 = scmp.ne.s32.totalorder %s2132_s3, %s1572_s25  ;;  %p1579_p5 = scmp.lt.u32.totalorder %s1572_s25, %s2132_s3 }
  0x27   : > { %p1575_p1 = pnand %p1573_p8, %p1546_p9 }
  0x29   : > { %p1576_p4 = pneg %p1575_p1 }
  0x2b   : > { %p1581_p10 = pnand %p1579_p5, %p1576_p4 }
  0x2d   : > { %1584 = shalt.err (!%p1581_p10)
}
  0x2e   : > { %s1585_s26 = scalar_lea.vmem %s1757_s29, 256  ;;  %p1593_p0 = scmp.lt.s32.totalorder %s1757_s29, %s1757_s29 }
  0x2f   : > { %p1586_p11 = scmp.ne.s32.totalorder %s1757_s29, %s1585_s26  ;;  %p1594_p2 = scmp.lt.s32.totalorder %s1585_s26, %s1585_s26 }
  0x31   : > { %p1588_p12 = pnand %p1586_p11, %p1546_p9  ;;  %p1595_p3 = por %p1594_p2, %p1593_p0 }
  0x33   : > { %p1589_p13 = pneg %p1588_p12 }
  0x35   : > { %p1596_p6 = pnand %p1595_p3, %p1589_p13 }
  0x37   : > { %1599 = shalt.err (!%p1596_p6)
}
  0x38   : > { %1421 = dma.hbm_to_vmem [thread:$0]  (!%p1753_p7), %s2132_s3, 256, %s1757_s29, [#allocation5], %s1672_s13, %s1672_s13, %s1673_s14  }
  0x39   : > { %s1807_s10 = sadd.s32 1, %s1668_s21   ;;  %s26_s11 = sadd.s32 1, %s1664_s20 }
  0x3a   : > { %s23_s27 = ssub.s32 %s1668_s21, %s1807_s10  ;;  %p33_p9 = scmp.ne.s32.totalorder %s1664_s20, %s1660_s19 }
  0x3b   : > { %p24_p8 = scmp.eq.s32.totalorder %s23_s27, 0  ;;  %p34_p1 = scmp.eq.s32.totalorder %s1668_s21, 0 }
  0x3c   : > { %p1428_p4 = scmp.lt.s32.totalorder %s1668_s21, 2  ;;  %s205_s12 = sand.u32 1, %s1664_s20  }
  0x3d   : > { %s1818_s15 = scalar_select %p24_p8, %s1664_s20, %s26_s11  }
  0x3e   : > { %p35_p5 = por %p34_p1, %p33_p9  ;;  %s1222_s16 = sshll.u32 %s205_s12, 6 }
  0x3f   : > { %s1263_s17 = sshll.u32 %s1668_s21, 10  ;;  %s209_s29 = scalar_lea.vmem [#allocation2], %s1222_s16 }
  0x40   : > { %s1824_s28 = scalar_lea.hbm %s2129_s0, %s1263_s17  ;;  %s216_s13 = sshll.u32 %s209_s29, 4  ;;  %s1830_s13 = int_to_ptr.vmem [resolvable:$true] %s216_s13 }
  0x41   : > { %p1826_p7 = pnand %p1428_p4, %p35_p5  ;;  %s1832_s21 = scalar_lea.sflag [#allocation3], %s205_s12 }
  0x42   : > { %s1600_s30 = scalar_lea.hbm %s1824_s28, 1024  ;;  %s1605_s26 = scalar_lea.hbm %s2129_s0, 2048 }
  0x43   : > { %p1601_p10 = scmp.ne.s32.totalorder %s1824_s28, %s1600_s30  ;;  %p1602_p11 = pneg %p1826_p7 }
  0x44   : > { %p1606_p0 = scmp.lt.u32.totalorder %s1824_s28, %s2129_s0  ;;  %p1607_p2 = scmp.lt.u32.totalorder %s1605_s26, %s1600_s30 }
  0x45   : > { %p1603_p12 = pnand %p1602_p11, %p1601_p10  ;;  %p1609_p6 = scmp.lt.u32.totalorder %s1600_s30, %s1824_s28 }
  0x46   : > { %p1608_p3 = por %p1607_p2, %p1606_p0 }
  0x47   : > { %p1604_p13 = pneg %p1603_p12 }
  0x48   : > { %p1610_p9 = por %p1609_p6, %p1608_p3 }
  0x4a   : > { %p1611_p8 = pnand %p1610_p9, %p1604_p13 }
  0x4c   : > { %1614 = shalt.err (!%p1611_p8)
}
  0x4d   : > { %s1615_s11 = scalar_lea.vmem %s1830_s13, 1024  ;;  %s1674_s27 = smov [#allocation2]  }
  0x4e   : > { %p1616_p1 = scmp.ne.s32.totalorder %s1830_s13, %s1615_s11  ;;  %s1620_s12 = sshll.u32 %s1674_s27, 4  ;;  %s1621_s12 = int_to_ptr.vmem [resolvable:$false] %s1620_s12 }
  0x4f   : > { %s1622_s16 = scalar_lea.vmem %s1621_s12, 2048  ;;  %p1623_p10 = scmp.lt.s32.totalorder %s1830_s13, %s1621_s12 }
  0x50   : > { %p1618_p4 = pnand %p1616_p1, %p1602_p11  ;;  %p1624_p12 = scmp.lt.s32.totalorder %s1622_s16, %s1615_s11 }
  0x52   : > { %p1619_p5 = pneg %p1618_p4  ;;  %p1625_p0 = por %p1624_p12, %p1623_p10 }
  0x54   : > { %p1626_p2 = pnand %p1625_p0, %p1619_p5 }
  0x56   : > { %1629 = shalt.err (!%p1626_p2)
}
  0x57   : > { %s1675_s17 = smov 128   ;;  %s1676_s18 = smov 8  }
  0x58   : > { %1425 = dma.hbm_to_vmem [thread:$0]  (!%p1826_p7), %s1824_s28, 1024, %s1830_s13, %s1832_s21, %s1675_s17, %s1675_s17, %s1676_s18  }
  0x59   : > { %p2142_p11 = scmp.ne.s32.totalorder %s2139_s24, 0 }
  0x5a   : > { %s230_s25 = sand.u32 (!%p2142_p11), 1, %s1660_s19   ;;  %p2143_p13 = scmp.ne.s32.totalorder (!%p2142_p11), %s2138_s23, 0 }
  0x5b   : > { %228 = sbr.rel (%p2142_p11) target bundleno = 1988 (0x7c4), region = 40  ;;  %s1226_s29 = sshll.u32 (!%p2142_p11), %s230_s25, 6 }
  0x5c   : > { %s231_s30 = scalar_lea.sflag (!%p2142_p11), [#allocation3], %s230_s25  ;;  %s234_s6 = scalar_lea.vmem (!%p2142_p11), [#allocation2], %s1226_s29 }
  0x62   : > { %1647 = dma.done.wait (%p2143_p13), %s231_s30, 1024  }
  0x63   : > { %1649 = vsyncadd (%p2143_p13), %s231_s30, 4294966272  ;;  %p2144_p3 = scmp.eq.s32.totalorder %s1733_s22, 0 }
  0x65   : > { %1651 = dma.done.wait (%p2144_p3), [#allocation5], 512   ;;  %p2145_p6 = pmov %p2144_p3 }
  0x66   : > { %v1476_v0 = vld [vmem:[#allocation4] sm:$0xff]   ;;  %v1477_v1 = vld [vmem:[#allocation4 + $0x8] sm:$0xff]   ;;  %vm310_vm0 = vcmask 261120   ;;  %v1877_v5 = vld [vmem:[%s234_s6 + $0x10] sm:$0xff]  ;;  %vm404_vm1 = vcmask 130048   ;;  %s1677_s28 = smov 112  }
  0x67   : > { %1653 = vsyncadd (%p2145_p6), [#allocation5], 4294966784  ;;  %1309 = vmatprep.subr.bf16.mxu0 %v1476_v0  ;;  %v1871_v2 = vld [vmem:[%s234_s6] sm:$0xff]  ;;  %v1873_v3 = vld [vmem:[%s234_s6 + $0x8] sm:$0xff]  ;;  %s1678_s13 = smov 96   ;;  %s1679_s14 = smov 64  }
  0x68   : > { %1310 = vmatpush3.bf16.msra.mxu0 %v1476_v0  ;;  %v283_v4 = vpack.c.bf16 %v1873_v3, %v1871_v2  ;;  %v1879_v6 = vld [vmem:[%s234_s6 + $0x18] sm:$0xff]  ;;  %v1881_v7 = vld [vmem:[%s234_s6 + $0x20] sm:$0xff]  ;;  %v1883_v8 = vld [vmem:[%s234_s6 + $0x28] sm:$0xff]  ;;  %vm494_vm2 = vcmask 523264   ;;  %s1680_s21 = smov 80   ;;  %s1681_s7 = smov 48  }
  0x69   : > { %1311 = vmatprep.subr.bf16.mxu0 %v1477_v1  ;;  %v284_v9 = vpack.c.bf16 %v1879_v6, %v1877_v5  ;;  %v285_v10 = vpack.c.bf16 %v1883_v8, %v1881_v7  ;;  %v1892_v11 = vld [vmem:[%s234_s6 + $0x30] sm:$0xff]  ;;  %v1894_v12 = vld [vmem:[%s234_s6 + $0x38] sm:$0xff]  ;;  %v1231_v15 = vld [vmem:[%s2131_s2] ss:$0 sm:$0xff]  ;;  %s1682_s26 = smov 16   ;;  %s1683_s11 = smov 32  }
  0x6a   : > { %1313 = vmatprep.mubr.msk.bf16.mxu0 %vm310_vm0, %v283_v4  ;;  %v286_v13 = vpack.c.bf16 %v1894_v12, %v1892_v11  ;;  %p269_p7 = scmp.lt.s32.totalorder %s1733_s22, 1  ;;  %vm1126_vm3 = vcmask 785408  }
  0x6c   : > { %1312 = vmatpush3.bf16.msra.mxu0 %v1477_v1  ;;  %s2151_s22 = smov (!%p269_p7, %s1733_s22), 1 }
  0x6d   : > { %s1264_s27 = sshll.u32 %s2151_s22, 4 }
  0x6e   : > { %s273_s17 = scalar_lea.vmem %s2134_s5, %s1264_s27 }
  0x6f   : > { %1314 = vmatmul.mubr.msk.bf16.vlgmr.msra.gmra.mrb[0].mxu0 %vm310_vm0, %v284_v9 }
  0x70   : > { %1317 = vmatprep.mubr.msk.bf16.mxu0 %vm310_vm0, %v285_v10 }
  0x77   : > { %1318 = vmatmul.mubr.msk.bf16.gmra.mrb[4].mxu0 %vm310_vm0, %v286_v13 }
 0x142   : > { %v1315_v14 = vpop.f32.mrb[0].mxu0 }
 0x143   : > { %v357_v16 = vpop.f32.mrb[1].mxu0  ;;  %v366_v18 = vadd.f32 %v1315_v14, %v1231_v15 }
 0x144   : > { %v1316_v17 = vpop.f32.mrb[2].mxu0  ;;  %v358_v21 = vadd.f32 %v1231_v15, %v357_v16 }
 0x145   : > { %v369_v19 = vadd.f32 %v1316_v17, %v1231_v15  ;;  %v360_v20 = vpop.f32.mrb[3].mxu0 }
 0x146   : > { %v361_v22 = vadd.f32 %v1231_v15, %v360_v20 }
 0x147   : > { %v1902_v23 = vpack.c.bf16 %v369_v19, %v366_v18 }
 0x148   : > { %v1904_v24 = vpack.c.bf16 %v361_v22, %v358_v21 }
 0x14a   : > { %v1319_v25 = vpop.f32.mrb[4].mxu0  ;;  %396 = vrot.lane.b32.xlu0 %v1904_v24, %s1677_s28  ;;  %1329 = vmatprep.mubr.msk.bf16.mxu1 %vm404_vm1, %v1904_v24 }
 0x14b   : > { %v382_v26 = vadd.f32 %v1319_v25, %v1231_v15  ;;  %v373_v27 = vpop.f32.mrb[5].mxu0 }
 0x14c   : > { %v374_v28 = vadd.f32 %v1231_v15, %v373_v27  ;;  %v1320_v29 = vpop.f32.mrb[6].mxu0 }
 0x14d   : > { %v385_v30 = vadd.f32 %v1320_v29, %v1231_v15  ;;  %v376_v31 = vpop.f32.mrb[7].mxu0 }
 0x14e   : > { %v377_v32 = vadd.f32 %v1231_v15, %v376_v31  ;;  %398 = vrot.lane.b32.xlu0 %v1902_v23, %s1677_s28 }
 0x14f   : > { %v1910_v33 = vpack.c.bf16 %v385_v30, %v382_v26 }
 0x150   : > { %v1912_v34 = vpack.c.bf16 %v377_v32, %v374_v28 }
 0x152   : > { %400 = vrot.lane.b32.xlu1 %v1912_v34, %s1677_s28  ;;  %573 = vrot.lane.b32.xlu0 %v1902_v23, %s1678_s13 }
 0x156   : > { %402 = vrot.lane.b32.xlu1 %v1910_v33, %s1677_s28 }
 0x15a   : > { %571 = vrot.lane.b32.xlu1 %v1904_v24, %s1678_s13 }
 0x15e   : > { %577 = vrot.lane.b32.xlu1 %v1910_v33, %s1678_s13 }
 0x162   : > { %688 = vrot.lane.b32.xlu1 %v1904_v24, %s1679_s14 }
 0x166   : > { %575 = vrot.lane.b32.xlu1 %v1912_v34, %s1678_s13 }
 0x1bc   : > { %v397_v35 = vpop.permute.xlu0 %396 }
 0x1bd   : > { %1397 = vmatprep.subr.msk.bf16.mxu1 %vm404_vm1, %v397_v35  ;;  %v418_v36 = vsel %vm404_vm1, %v397_v35, 0 }
 0x1be   : > { %1322 = vmatpush3.bf16.xpose.msra.mxu1 %v418_v36 }
 0x1c0   : > { %v399_v37 = vpop.permute.xlu0 %398 }
 0x1c1   : > { %1398 = vmatprep.subr.msk.bf16.mxu1 %vm404_vm1, %v399_v37  ;;  %v421_v39 = vsel %vm404_vm1, %v399_v37, 0 }
 0x1c4   : > { %v401_v38 = vpop.permute.xlu1 %400  ;;  %v574_v43 = vpop.permute.xlu0 %573 }
 0x1c5   : > { %v424_v42 = vsel %vm404_vm1, %v401_v38, 0 }
 0x1c6   : > { %1324 = vmatpush3.bf16.xpose.msra.mxu1 %v421_v39 }
 0x1c7   : > { %1399 = vmatprep.subr.msk.bf16.mxu1 %vm404_vm1, %v401_v38 }
 0x1c8   : > { %v403_v40 = vpop.permute.xlu1 %402 }
 0x1c9   : > { %v427_v46 = vsel %vm404_vm1, %v403_v40, 0 }
 0x1cc   : > { %v572_v41 = vpop.permute.xlu1 %571 }
 0x1cd   : > { %1337 = vmatprep.subr.bf16.mxu0 %v572_v41 }
 0x1ce   : > { %1326 = vmatpush3.bf16.xpose.msra.mxu1 %v424_v42  ;;  %1338 = vmatpush3.bf16.msra.mxu0 %v572_v41 }
 0x1cf   : > { %1400 = vmatprep.subr.msk.bf16.mxu1 %vm404_vm1, %v403_v40  ;;  %1339 = vmatprep.subr.bf16.mxu0 %v574_v43 }
 0x1d0   : > { %v578_v44 = vpop.permute.xlu1 %577 }
 0x1d2   : > { %1340 = vmatpush3.bf16.msra.mxu0 %v574_v43 }
 0x1d4   : > { %v1933_v45 = vpop.permute.xlu1 %688 }
 0x1d5   : > { %v709_v36 = vsel %vm404_vm1, %v1933_v45, 0 }
 0x1d6   : > { %1328 = vmatpush3.bf16.xpose.msra.mxu1 %v427_v46 }
 0x1d8   : > { %v576_v47 = vpop.permute.xlu1 %575 }
 0x1d9   : > { %1341 = vmatprep.subr.bf16.mxu0 %v576_v47 }
 0x1da   : > { %1342 = vmatpush3.bf16.msra.mxu0 %v576_v47 }
 0x1db   : > { %1343 = vmatprep.subr.bf16.mxu0 %v578_v44 }
 0x1dd   : > { %1330 = vmatmul.mubr.msk.bf16.vlgmr.msra.gmra.mrb[0].mxu1 %vm404_vm1, %v1902_v23 }
 0x1de   : > { %1333 = vmatprep.mubr.msk.bf16.mxu1 %vm404_vm1, %v1912_v34  ;;  %1344 = vmatpush3.bf16.msra.mxu0 %v578_v44 }
 0x1df   : > { %1401 = vmatprep.subr.msk.bf16.mxu0 %vm404_vm1, %v1933_v45 }
 0x1e5   : > { %1334 = vmatmul.mubr.msk.bf16.gmra.mrb[4].mxu1 %vm404_vm1, %v1910_v33 }
 0x2b0   : > { %v1331_v48 = vpop.f32.mrb[0].mxu1 }
 0x2b1   : > { %v463_v49 = vpop.f32.mrb[1].mxu1  ;;  %v501_v50 = vsel %vm494_vm2, %v1331_v48, -inf }
 0x2b2   : > { %502 = vmax.xlane.f32.xlu0 %v501_v50  ;;  %v1332_v51 = vpop.f32.mrb[2].mxu1  ;;  %v495_v54 = vsel %vm494_vm2, %v463_v49, -inf }
 0x2b3   : > { %v466_v52 = vpop.f32.mrb[3].mxu1  ;;  %v504_v57 = vsel %vm494_vm2, %v1332_v51, -inf }
 0x2b4   : > { %v498_v53 = vsel %vm494_vm2, %v466_v52, -inf }
 0x2b5   : > { %499 = vmax.xlane.f32.xlu1 %v498_v53 }
 0x2b6   : > { %496 = vmax.xlane.f32.xlu0 %v495_v54 }
 0x2b8   : > { %v1335_v55 = vpop.f32.mrb[4].mxu1 }
 0x2b9   : > { %v1947_v56 = vpop.f32.mrb[5].mxu1  ;;  %v513_v60 = vsel %vm494_vm2, %v1335_v55, -inf }
 0x2ba   : > { %505 = vmax.xlane.f32.xlu0 %v504_v57  ;;  %v1336_v58 = vpop.f32.mrb[6].mxu1  ;;  %v507_v61 = vsel %vm494_vm2, %v1947_v56, -inf }
 0x2bb   : > { %v1950_v59 = vpop.f32.mrb[7].mxu1  ;;  %v516_v62 = vsel %vm494_vm2, %v1336_v58, -inf }
 0x2bc   : > { %v510_v63 = vsel %vm494_vm2, %v1950_v59, -inf }
 0x2be   : > { %514 = vmax.xlane.f32.xlu0 %v513_v60 }
 0x2c2   : > { %508 = vmax.xlane.f32.xlu0 %v507_v61 }
 0x2c6   : > { %692 = vrot.lane.b32.xlu1 %v1912_v34, %s1679_s14  ;;  %517 = vmax.xlane.f32.xlu0 %v516_v62 }
 0x2dc   : > { %690 = vrot.lane.b32.xlu0 %v1902_v23, %s1679_s14 }
 0x2e0   : > { %680 = vrot.lane.b32.xlu0 %v1904_v24, %s1680_s21 }
 0x2e4   : > { %684 = vrot.lane.b32.xlu0 %v1912_v34, %s1680_s21 }
 0x2ea   : > { %511 = vmax.xlane.f32.xlu1 %v510_v63 }
 0x2fb   : > { %694 = vrot.lane.b32.xlu1 %v1910_v33, %s1679_s14 }
 0x2ff   : > { %682 = vrot.lane.b32.xlu1 %v1902_v23, %s1680_s21 }
 0x303   : > { %686 = vrot.lane.b32.xlu1 %v1910_v33, %s1680_s21 }
 0x307   : > { %861 = vrot.lane.b32.xlu1 %v1904_v24, %s1681_s7 }
 0x33f   : > { %v503_v0 = vpop.xlane.xlu0 %502 }
 0x340   : > { %v521_v4 = vsub.f32 %v1331_v48, %v503_v0 }
 0x342   : > { %v500_v1 = vpop.xlane.xlu1 %499  ;;  %v531_v16 = vmul.f32 1.442695, %v521_v4 }
 0x343   : > { %v520_v9 = vsub.f32 %v466_v52, %v500_v1  ;;  %v497_v10 = vpop.xlane.xlu0 %496 }
 0x344   : > { %v519_v13 = vsub.f32 %v463_v49, %v497_v10 }
 0x345   : > { %v529_v14 = vmul.f32 1.442695, %v520_v9 }
 0x346   : > { %v527_v15 = vmul.f32 1.442695, %v519_v13  ;;  %v693_v41 = vpop.permute.xlu1 %692 }
 0x347   : > { %1480 = vpow2.f32 %v529_v14  ;;  %v506_v17 = vpop.xlane.xlu0 %505  ;;  %v715_v43 = vsel %vm404_vm1, %v693_v41, 0 }
 0x348   : > { %1482 = vpow2.f32 %v527_v15  ;;  %v522_v18 = vsub.f32 %v1332_v51, %v506_v17 }
 0x349   : > { %1484 = vpow2.f32 %v531_v16 }
 0x34a   : > { %v533_v19 = vmul.f32 1.442695, %v522_v18 }
 0x34b   : > { %v515_v20 = vpop.xlane.xlu0 %514 }
 0x34c   : > { %1486 = vpow2.f32 %v533_v19  ;;  %v525_v21 = vsub.f32 %v1335_v55, %v515_v20 }
 0x34e   : > { %v539_v26 = vmul.f32 1.442695, %v525_v21 }
 0x34f   : > { %v509_v22 = vpop.xlane.xlu0 %508 }
 0x350   : > { %1488 = vpow2.f32 %v539_v26  ;;  %v523_v44 = vsub.f32 %v1947_v56, %v509_v22 }
 0x351   : > { %v1970_v24 = vpop.eup %1480 }
 0x352   : > { %v1972_v25 = vpop.eup %1482  ;;  %v535_v45 = vmul.f32 1.442695, %v523_v44 }
 0x353   : > { %v518_v27 = vpop.xlane.xlu0 %517  ;;  %v567_v28 = vpack.c.bf16 %v1970_v24, %v1972_v25  ;;  %v1976_v30 = vpop.eup %1484 }
 0x354   : > { %v526_v29 = vsub.f32 %v1336_v58, %v518_v27 }
 0x355   : > { %1345 = vmatprep.mubr.msk.bf16.mxu0 %vm494_vm2, %v567_v28 }
 0x356   : > { %v1979_v31 = vpop.eup %1486  ;;  %v541_v32 = vmul.f32 1.442695, %v526_v29 }
 0x357   : > { %v568_v35 = vpack.c.bf16 %v1979_v31, %v1976_v30  ;;  %v691_v37 = vpop.permute.xlu0 %690 }
 0x358   : > { %1490 = vpow2.f32 %v541_v32  ;;  %v712_v39 = vsel %vm404_vm1, %v691_v37, 0 }
 0x359   : > { %1346 = vmatmul.mubr.msk.bf16.vlgmr.msra.gmra.mrb[8].mxu0 %vm494_vm2, %v568_v35  ;;  %1492 = vpow2.f32 %v535_v45 }
 0x35a   : > { %1354 = vmatpush3.bf16.xpose.msra.mxu0 %v709_v36  ;;  %v1987_v38 = vpop.eup %1488 }
 0x35b   : > { %1402 = vmatprep.subr.msk.bf16.mxu0 %vm404_vm1, %v691_v37  ;;  %v681_v57 = vpop.permute.xlu0 %680 }
 0x35f   : > { %v685_v58 = vpop.permute.xlu0 %684 }
 0x362   : > { %v1990_v40 = vpop.eup %1490  ;;  %1356 = vmatpush3.bf16.xpose.msra.mxu0 %v712_v39 }
 0x363   : > { %1403 = vmatprep.subr.msk.bf16.mxu0 %vm404_vm1, %v693_v41  ;;  %v570_v42 = vpack.c.bf16 %v1990_v40, %v1987_v38  ;;  %v2000_v53 = vpop.eup %1492 }
 0x36a   : > { %1358 = vmatpush3.bf16.xpose.msra.mxu0 %v715_v43 }
 0x377   : > { %v512_v46 = vpop.xlane.xlu1 %511 }
 0x378   : > { %v524_v47 = vsub.f32 %v1950_v59, %v512_v46 }
 0x37a   : > { %v537_v48 = vmul.f32 1.442695, %v524_v47 }
 0x37b   : > { %v695_v49 = vpop.permute.xlu1 %694 }
 0x37c   : > { %1494 = vpow2.f32 %v537_v48  ;;  %v718_v50 = vsel %vm404_vm1, %v695_v49, 0  ;;  %1404 = vmatprep.subr.msk.bf16.mxu0 %vm404_vm1, %v695_v49 }
 0x37d   : > { %1360 = vmatpush3.bf16.xpose.msra.mxu0 %v718_v50 }
 0x37f   : > { %v683_v51 = vpop.permute.xlu1 %682 }
 0x383   : > { %v687_v52 = vpop.permute.xlu1 %686 }
 0x386   : > { %v2002_v54 = vpop.eup %1494 }
 0x387   : > { %v862_v55 = vpop.permute.xlu1 %861  ;;  %v569_v56 = vpack.c.bf16 %v2002_v54, %v2000_v53 }
 0x388   : > { %1369 = vmatprep.subr.bf16.mxu1 %v862_v55 }
 0x389   : > { %1349 = vmatprep.mubr.msk.bf16.mxu0 %vm494_vm2, %v569_v56  ;;  %1370 = vmatpush3.bf16.msra.mxu1 %v862_v55 }
 0x38a   : > { %1350 = vmatmul.mubr.msk.bf16.gmra.mrb[12].mxu0 %vm494_vm2, %v570_v42 }
 0x38b   : > { %1361 = vmatprep.mubr.msk.bf16.mxu0 %vm404_vm1, %v681_v57 }
 0x392   : > { %1362 = vmatmul.mubr.msk.bf16.vlgmr.msra.gmra.mrb[16].mxu0 %vm404_vm1, %v683_v51 }
 0x393   : > { %1365 = vmatprep.mubr.msk.bf16.mxu0 %vm404_vm1, %v685_v58 }
 0x39a   : > { %1366 = vmatmul.mubr.msk.bf16.gmra.mrb[20].mxu0 %vm404_vm1, %v687_v52 }
 0x42c   : > { %v2012_v59 = vpop.f32.mrb[8].mxu0 }
 0x42d   : > { %v2014_v60 = vpop.f32.mrb[9].mxu0 }
 0x42e   : > { %v2016_v61 = vpop.f32.mrb[10].mxu0 }
 0x42f   : > { %v2018_v62 = vpop.f32.mrb[11].mxu0 }
 0x45d   : > { %v2020_v63 = vpop.f32.mrb[12].mxu0 }
 0x45e   : > { %v2022_v0 = vpop.f32.mrb[13].mxu0 }
 0x45f   : > { %v2024_v1 = vpop.f32.mrb[14].mxu0 }
 0x460   : > { %v2026_v4 = vpop.f32.mrb[15].mxu0 }
 0x465   : > { %v1363_v9 = vpop.f32.mrb[16].mxu0 }
 0x466   : > { %v754_v10 = vpop.f32.mrb[17].mxu0  ;;  %v791_v13 = vsel %vm494_vm2, %v1363_v9, -inf }
 0x467   : > { %792 = vmax.xlane.f32.xlu0 %v791_v13  ;;  %v1364_v14 = vpop.f32.mrb[18].mxu0  ;;  %v785_v17 = vsel %vm494_vm2, %v754_v10, -inf }
 0x468   : > { %v757_v15 = vpop.f32.mrb[19].mxu0  ;;  %v794_v20 = vsel %vm494_vm2, %v1364_v14, -inf }
 0x469   : > { %v788_v16 = vsel %vm494_vm2, %v757_v15, -inf }
 0x46a   : > { %789 = vmax.xlane.f32.xlu1 %v788_v16 }
 0x46b   : > { %786 = vmax.xlane.f32.xlu0 %v785_v17 }
 0x46d   : > { %v1367_v18 = vpop.f32.mrb[20].mxu0 }
 0x46e   : > { %v770_v19 = vpop.f32.mrb[21].mxu0  ;;  %v803_v21 = vsel %vm494_vm2, %v1367_v18, -inf }
 0x46f   : > { %795 = vmax.xlane.f32.xlu0 %v794_v20  ;;  %804 = vmax.xlane.f32.xlu1 %v803_v21  ;;  %v1368_v22 = vpop.f32.mrb[22].mxu0  ;;  %v797_v27 = vsel %vm494_vm2, %v770_v19, -inf }
 0x470   : > { %v773_v26 = vpop.f32.mrb[23].mxu0  ;;  %v806_v28 = vsel %vm494_vm2, %v1368_v22, -inf }
 0x471   : > { %v800_v29 = vsel %vm494_vm2, %v773_v26, -inf }
 0x473   : > { %798 = vmax.xlane.f32.xlu1 %v797_v27  ;;  %807 = vmax.xlane.f32.xlu0 %v806_v28 }
 0x477   : > { %801 = vmax.xlane.f32.xlu0 %v800_v29 }
 0x484   : > { %865 = vrot.lane.b32.xlu1 %v1912_v34, %s1681_s7 }
 0x488   : > { %867 = vrot.lane.b32.xlu1 %v1910_v33, %s1681_s7 }
 0x48d   : > { %863 = vrot.lane.b32.xlu0 %v1902_v23, %s1681_s7 }
 0x4f4   : > { %v793_v32 = vpop.xlane.xlu0 %792 }
 0x4f5   : > { %v811_v35 = vsub.f32 %v1363_v9, %v793_v32 }
 0x4f7   : > { %v790_v36 = vpop.xlane.xlu1 %789  ;;  %v821_v43 = vmul.f32 1.442695, %v811_v35 }
 0x4f8   : > { %v810_v37 = vsub.f32 %v757_v15, %v790_v36  ;;  %v787_v39 = vpop.xlane.xlu0 %786 }
 0x4f9   : > { %v809_v41 = vsub.f32 %v754_v10, %v787_v39 }
 0x4fa   : > { %v819_v42 = vmul.f32 1.442695, %v810_v37 }
 0x4fb   : > { %v817_v44 = vmul.f32 1.442695, %v809_v41 }
 0x4fc   : > { %1496 = vpow2.f32 %v819_v42  ;;  %v796_v45 = vpop.xlane.xlu0 %795  ;;  %v805_v46 = vpop.xlane.xlu1 %804 }
 0x4fd   : > { %1498 = vpow2.f32 %v817_v44  ;;  %v812_v34 = vsub.f32 %v1364_v14, %v796_v45  ;;  %v815_v47 = vsub.f32 %v1367_v18, %v805_v46  ;;  %v546_v44 = vsel %vm494_vm2, %v1970_v24, 0.0 }
 0x4fe   : > { %1500 = vpow2.f32 %v821_v43  ;;  %v543_v43 = vsel %vm494_vm2, %v1972_v25, 0.0  ;;  %v549_v45 = vsel %vm494_vm2, %v1976_v30, 0.0  ;;  %v552_v46 = vsel %vm494_vm2, %v1979_v31, 0.0 }
 0x4ff   : > { %v823_v33 = vmul.f32 1.442695, %v812_v34  ;;  %v829_v48 = vmul.f32 1.442695, %v815_v47  ;;  %v555_v34 = vsel %vm494_vm2, %v2000_v53, 0.0  ;;  %v558_v25 = vsel %vm494_vm2, %v2002_v54, 0.0 }
 0x500   : > { %v808_v49 = vpop.xlane.xlu0 %807  ;;  %v799_v23 = vpop.xlane.xlu1 %798  ;;  %v561_v24 = vsel %vm494_vm2, %v1987_v38, 0.0  ;;  %v564_v30 = vsel %vm494_vm2, %v1990_v40, 0.0  ;;  %v1478_v47 = vld [vmem:[#allocation6] sm:$0xff]  }
 0x501   : > { %1502 = vpow2.f32 %v823_v33  ;;  %v816_v50 = vsub.f32 %v1368_v22, %v808_v49  ;;  %v813_v51 = vsub.f32 %v770_v19, %v799_v23  ;;  %v1479_v33 = vld [vmem:[#allocation6 + $0x8] sm:$0xff]  }
 0x502   : > { %1504 = vpow2.f32 %v829_v48 }
 0x503   : > { %v831_v52 = vmul.f32 1.442695, %v816_v50  ;;  %v825_v55 = vmul.f32 1.442695, %v813_v51 }
 0x504   : > { %v802_v56 = vpop.xlane.xlu0 %801  ;;  %v866_v14 = vpop.permute.xlu1 %865 }
 0x505   : > { %1506 = vpow2.f32 %v831_v52  ;;  %v814_v57 = vsub.f32 %v773_v26, %v802_v56 }
 0x506   : > { %v1497_v58 = vpop.eup %1496  ;;  %1508 = vpow2.f32 %v825_v55 }
 0x507   : > { %v1499_v9 = vpop.eup %1498  ;;  %v827_v10 = vmul.f32 1.442695, %v814_v57  ;;  %v836_v13 = vsel %vm494_vm2, %v1497_v58, 0.0 }
 0x508   : > { %v864_v15 = vpop.permute.xlu0 %863  ;;  %837 = vadd.xlane.f32.xlu1 %v836_v13  ;;  %v833_v16 = vsel %vm494_vm2, %v1499_v9, 0.0  ;;  %v857_v17 = vpack.c.bf16 %v1497_v58, %v1499_v9  ;;  %v1501_v18 = vpop.eup %1500 }
 0x509   : > { %1510 = vpow2.f32 %v827_v10  ;;  %834 = vadd.xlane.f32.xlu0 %v833_v16  ;;  %1371 = vmatprep.subr.bf16.mxu1 %v864_v15  ;;  %v839_v21 = vsel %vm494_vm2, %v1501_v18, 0.0  ;;  %v868_v26 = vpop.permute.xlu1 %867 }
 0x50a   : > { %1372 = vmatpush3.bf16.msra.mxu1 %v864_v15  ;;  %1377 = vmatprep.mubr.msk.bf16.mxu1 %vm494_vm2, %v857_v17 }
 0x50b   : > { %v1503_v19 = vpop.eup %1502  ;;  %1373 = vmatprep.subr.bf16.mxu1 %v866_v14 }
 0x50c   : > { %v858_v20 = vpack.c.bf16 %v1503_v19, %v1501_v18  ;;  %v1505_v22 = vpop.eup %1504  ;;  %v842_v29 = vsel %vm494_vm2, %v1503_v19, 0.0 }
 0x50d   : > { %840 = vadd.xlane.f32.xlu0 %v839_v21  ;;  %v851_v41 = vsel %vm494_vm2, %v1505_v22, 0.0 }
 0x50e   : > { %1374 = vmatpush3.bf16.msra.mxu1 %v866_v14 }
 0x50f   : > { %v1507_v27 = vpop.eup %1506  ;;  %1375 = vmatprep.subr.bf16.mxu1 %v868_v26 }
 0x510   : > { %v1509_v28 = vpop.eup %1508  ;;  %v860_v32 = vpack.c.bf16 %v1507_v27, %v1505_v22  ;;  %v854_v42 = vsel %vm494_vm2, %v1507_v27, 0.0 }
 0x511   : > { %843 = vadd.xlane.f32.xlu0 %v842_v29  ;;  %v845_v35 = vsel %vm494_vm2, %v1509_v28, 0.0 }
 0x512   : > { %846 = vadd.xlane.f32.xlu1 %v845_v35  ;;  %1376 = vmatpush3.bf16.msra.mxu1 %v868_v26 }
 0x513   : > { %v1511_v36 = vpop.eup %1510  ;;  %1385 = vmatprep.subr.bf16.mxu1 %v1478_v47 }
 0x514   : > { %v848_v37 = vsel %vm494_vm2, %v1511_v36, 0.0  ;;  %v859_v39 = vpack.c.bf16 %v1511_v36, %v1509_v28 }
 0x515   : > { %849 = vadd.xlane.f32.xlu0 %v848_v37  ;;  %1378 = vmatmul.mubr.msk.bf16.vlgmr.msra.gmra.mrb[8].mxu1 %vm494_vm2, %v858_v20 }
 0x516   : > { %852 = vadd.xlane.f32.xlu1 %v851_v41  ;;  %1381 = vmatprep.mubr.msk.bf16.mxu1 %vm494_vm2, %v859_v39 }
 0x517   : > { %1386 = vmatpush3.bf16.msra.mxu1 %v1478_v47 }
 0x518   : > { %1387 = vmatprep.subr.bf16.mxu1 %v1479_v33 }
 0x519   : > { %855 = vadd.xlane.f32.xlu0 %v854_v42 }
 0x51a   : > { %544 = vadd.xlane.f32.xlu1 %v543_v43 }
 0x51b   : > { %1388 = vmatpush3.bf16.msra.mxu1 %v1479_v33 }
 0x51d   : > { %547 = vadd.xlane.f32.xlu0 %v546_v44  ;;  %1382 = vmatmul.mubr.msk.bf16.gmra.mrb[12].mxu1 %vm494_vm2, %v860_v32 }
 0x51e   : > { %550 = vadd.xlane.f32.xlu1 %v549_v45 }
 0x521   : > { %553 = vadd.xlane.f32.xlu0 %v552_v46 }
 0x522   : > { %556 = vadd.xlane.f32.xlu1 %v555_v34 }
 0x525   : > { %559 = vadd.xlane.f32.xlu0 %v558_v25 }
 0x526   : > { %562 = vadd.xlane.f32.xlu1 %v561_v24 }
 0x529   : > { %565 = vadd.xlane.f32.xlu0 %v564_v30 }
 0x595   : > { %v838_v48 = vpop.xlane.xlu1 %837 }
 0x596   : > { %v835_v31 = vpop.xlane.xlu0 %834 }
 0x59a   : > { %v841_v53 = vpop.xlane.xlu0 %840 }
 0x59e   : > { %v844_v49 = vpop.xlane.xlu0 %843 }
 0x59f   : > { %v847_v54 = vpop.xlane.xlu1 %846 }
 0x5a2   : > { %v850_v23 = vpop.xlane.xlu0 %849 }
 0x5a3   : > { %v853_v50 = vpop.xlane.xlu1 %852 }
 0x5a6   : > { %v856_v51 = vpop.xlane.xlu0 %855 }
 0x5a7   : > { %v545_v38 = vpop.xlane.xlu1 %544 }
 0x5a8   : > { %1512 = vrcp.f32 %v545_v38 }
 0x5aa   : > { %v548_v52 = vpop.xlane.xlu0 %547 }
 0x5ab   : > { %1514 = vrcp.f32 %v548_v52  ;;  %v551_v40 = vpop.xlane.xlu1 %550 }
 0x5ac   : > { %1516 = vrcp.f32 %v551_v40 }
 0x5ae   : > { %v554_v55 = vpop.xlane.xlu0 %553 }
 0x5af   : > { %1518 = vrcp.f32 %v554_v55  ;;  %v557_v56 = vpop.xlane.xlu1 %556 }
 0x5b0   : > { %1520 = vrcp.f32 %v557_v56 }
 0x5b2   : > { %v560_v57 = vpop.xlane.xlu0 %559  ;;  %v1513_v58 = vpop.eup %1512 }
 0x5b3   : > { %1522 = vrcp.f32 %v560_v57  ;;  %v563_v9 = vpop.xlane.xlu1 %562  ;;  %v2071_v14 = vmul.f32 %v1513_v58, %v2014_v60 }
 0x5b4   : > { %1524 = vrcp.f32 %v563_v9 }
 0x5b5   : > { %v1515_v10 = vpop.eup %1514 }
 0x5b6   : > { %v566_v13 = vpop.xlane.xlu0 %565  ;;  %v2074_v15 = vmul.f32 %v1515_v10, %v2018_v62  ;;  %v1517_v16 = vpop.eup %1516  ;;  %v1254_v10 = vld [vmem:[%s2133_s4] ss:$0 sm:$0xff] }
 0x5b7   : > { %1526 = vrcp.f32 %v566_v13  ;;  %v670_v20 = vmul.f32 %v1517_v16, %v2012_v59 }
 0x5b8   : > { %v676_v17 = vpack.c.bf16 %v2074_v15, %v2071_v14  ;;  %1528 = vrcp.f32 %v838_v48 }
 0x5b9   : > { %v1519_v18 = vpop.eup %1518  ;;  %1530 = vrcp.f32 %v841_v53 }
 0x5ba   : > { %v671_v19 = vmul.f32 %v1519_v18, %v2016_v61  ;;  %v1521_v21 = vpop.eup %1520  ;;  %1532 = vrcp.f32 %v844_v49 }
 0x5bb   : > { %v672_v27 = vmul.f32 %v1521_v21, %v2022_v0  ;;  %1534 = vrcp.f32 %v835_v31 }
 0x5bc   : > { %v677_v22 = vpack.c.bf16 %v671_v19, %v670_v20  ;;  %1536 = vrcp.f32 %v847_v54 }
 0x5bd   : > { %v1523_v26 = vpop.eup %1522  ;;  %1538 = vrcp.f32 %v853_v50 }
 0x5be   : > { %v673_v60 = vmul.f32 %v1523_v26, %v2026_v4  ;;  %v1525_v28 = vpop.eup %1524  ;;  %1540 = vrcp.f32 %v856_v51 }
 0x5bf   : > { %v674_v32 = vmul.f32 %v1525_v28, %v2020_v63  ;;  %1542 = vrcp.f32 %v850_v23 }
 0x5c0   : > { %v678_v62 = vpack.c.bf16 %v673_v60, %v672_v27 }
 0x5c1   : > { %v1527_v29 = vpop.eup %1526 }
 0x5c2   : > { %v675_v35 = vmul.f32 %v1527_v29, %v2024_v1  ;;  %v1529_v59 = vpop.eup %1528 }
 0x5c3   : > { %v1531_v0 = vpop.eup %1530 }
 0x5c4   : > { %v679_v36 = vpack.c.bf16 %v675_v35, %v674_v32  ;;  %v1533_v37 = vpop.eup %1532 }
 0x5c5   : > { %v1535_v41 = vpop.eup %1534 }
 0x5c6   : > { %v1537_v34 = vpop.eup %1536 }
 0x5c7   : > { %v1539_v24 = vpop.eup %1538 }
 0x5c8   : > { %v1541_v47 = vpop.eup %1540 }
 0x5c9   : > { %v1543_v31 = vpop.eup %1542 }
 0x5e8   : > { %v1379_v61 = vpop.f32.mrb[8].mxu1 }
 0x5e9   : > { %v919_v4 = vpop.f32.mrb[9].mxu1  ;;  %v960_v42 = vmul.f32 %v1531_v0, %v1379_v61 }
 0x5ea   : > { %v1380_v39 = vpop.f32.mrb[10].mxu1  ;;  %v958_v1 = vmul.f32 %v1535_v41, %v919_v4 }
 0x5eb   : > { %v961_v63 = vmul.f32 %v1533_v37, %v1380_v39  ;;  %v922_v43 = vpop.f32.mrb[11].mxu1 }
 0x5ec   : > { %v959_v44 = vmul.f32 %v1529_v59, %v922_v43 }
 0x5ed   : > { %v967_v45 = vpack.c.bf16 %v961_v63, %v960_v42 }
 0x5ee   : > { %v966_v46 = vpack.c.bf16 %v959_v44, %v958_v1 }
 0x5ef   : > { %976 = vrot.lane.b32.xlu0 %v967_v45, %s1682_s26 }
 0x5f0   : > { %v1383_v25 = vpop.f32.mrb[12].mxu1  ;;  %974 = vrot.lane.b32.xlu1 %v966_v46, %s1682_s26 }
 0x5f1   : > { %v935_v30 = vpop.f32.mrb[13].mxu1  ;;  %v964_v53 = vmul.f32 %v1539_v24, %v1383_v25 }
 0x5f2   : > { %v1384_v33 = vpop.f32.mrb[14].mxu1  ;;  %v962_v54 = vmul.f32 %v1537_v34, %v935_v30 }
 0x5f3   : > { %v965_v48 = vmul.f32 %v1541_v47, %v1384_v33  ;;  %v938_v49 = vpop.f32.mrb[15].mxu1 }
 0x5f4   : > { %v963_v23 = vmul.f32 %v1543_v31, %v938_v49 }
 0x5f5   : > { %v969_v50 = vpack.c.bf16 %v965_v48, %v964_v53 }
 0x5f6   : > { %v968_v51 = vpack.c.bf16 %v963_v23, %v962_v54 }
 0x5f8   : > { %978 = vrot.lane.b32.xlu1 %v968_v51, %s1682_s26 }
 0x5fc   : > { %980 = vrot.lane.b32.xlu1 %v969_v50, %s1682_s26 }
 0x661   : > { %v977_v38 = vpop.permute.xlu0 %976 }
 0x662   : > { %v975_v52 = vpop.permute.xlu1 %974  ;;  %v987_v55 = vsel %vm404_vm1, %v677_v22, %v977_v38 }
 0x663   : > { %v984_v40 = vsel %vm404_vm1, %v676_v17, %v975_v52 }
 0x664   : > { %1389 = vmatprep.mubr.msk.bf16.mxu1 %vm310_vm0, %v984_v40 }
 0x665   : > { %1390 = vmatmul.mubr.msk.bf16.vlgmr.msra.gmra.mrb[16].mxu1 %vm310_vm0, %v987_v55 }
 0x66a   : > { %v979_v56 = vpop.permute.xlu1 %978 }
 0x66b   : > { %v990_v57 = vsel %vm404_vm1, %v678_v62, %v979_v56 }
 0x66c   : > { %1393 = vmatprep.mubr.msk.bf16.mxu1 %vm310_vm0, %v990_v57 }
 0x66e   : > { %v981_v58 = vpop.permute.xlu1 %980 }
 0x66f   : > { %v993_v9 = vsel %vm404_vm1, %v679_v36, %v981_v58 }
 0x670   : > { %1394 = vmatmul.mubr.msk.bf16.gmra.mrb[20].mxu1 %vm310_vm0, %v993_v9 }
 0x738   : > { %v1391_v13 = vpop.f32.mrb[16].mxu1 }
 0x739   : > { %v1068_v14 = vadd.f32 %v1391_v13, %v1254_v10  ;;  %v1059_v15 = vpop.f32.mrb[17].mxu1 }
 0x73a   : > { %v1060_v16 = vadd.f32 %v1254_v10, %v1059_v15  ;;  %v1392_v17 = vpop.f32.mrb[18].mxu1 }
 0x73b   : > { %v1092_v18 = vadd.f32 %v1068_v14, %v1877_v5  ;;  %v1071_v19 = vadd.f32 %v1392_v17, %v1254_v10  ;;  %v1062_v20 = vpop.f32.mrb[19].mxu1 }
 0x73c   : > { %v1063_v21 = vadd.f32 %v1254_v10, %v1062_v20 }
 0x73d   : > { %v1093_v22 = vadd.f32 %v1071_v19, %v1879_v6  ;;  %1100 = vrot.lane.b32.xlu0 %v1092_v18, %s1683_s11 }
 0x73f   : > { %1102 = vrot.lane.b32.xlu1 %v1093_v22, %s1683_s11 }
 0x743   : > { %v1395_v26 = vpop.f32.mrb[20].mxu1 }
 0x744   : > { %v1075_v27 = vpop.f32.mrb[21].mxu1  ;;  %v1084_v29 = vadd.f32 %v1395_v26, %v1254_v10 }
 0x745   : > { %v1076_v60 = vadd.f32 %v1254_v10, %v1075_v27  ;;  %v1396_v28 = vpop.f32.mrb[22].mxu1 }
 0x746   : > { %v1078_v62 = vpop.f32.mrb[23].mxu1  ;;  %v1087_v5 = vadd.f32 %v1396_v28, %v1254_v10  ;;  %v1096_v6 = vadd.f32 %v1084_v29, %v1892_v11  ;;  %v1091_v11 = vadd.f32 %v1063_v21, %v1873_v3 }
 0x747   : > { %v1094_v32 = vadd.f32 %v1076_v60, %v1881_v7  ;;  %v1079_v35 = vadd.f32 %v1254_v10, %v1078_v62 }
 0x748   : > { %v1097_v59 = vadd.f32 %v1087_v5, %v1894_v12 }
 0x749   : > { %v1095_v36 = vadd.f32 %v1079_v35, %v1883_v8  ;;  %1108 = vrot.lane.b32.xlu0 %v1094_v32, %s1679_s14  ;;  %v1090_v8 = vadd.f32 %v1060_v16, %v1871_v2 }
 0x74b   : > { %1110 = vrot.lane.b32.xlu1 %v1095_v36, %s1679_s14 }
 0x74d   : > { %1116 = vrot.lane.b32.xlu0 %v1096_v6, %s1678_s13 }
 0x74f   : > { %1118 = vrot.lane.b32.xlu1 %v1097_v59, %s1678_s13 }
 0x7af   : > { %v1101_v61 = vpop.permute.xlu0 %1100 }
 0x7b0   : > { %v1122_v37 = vsel %vm310_vm0, %v1090_v8, %v1101_v61 }
 0x7b1   : > { %v1103_v7 = vpop.permute.xlu1 %1102 }
 0x7b2   : > { %v1123_v41 = vsel %vm310_vm0, %v1091_v11, %v1103_v7 }
 0x7bb   : > { %v1109_v0 = vpop.permute.xlu0 %1108 }
 0x7bc   : > { %v1124_v12 = vsel %vm494_vm2, %v1122_v37, %v1109_v0 }
 0x7bd   : > { %v1111_v4 = vpop.permute.xlu1 %1110 }
 0x7be   : > { %v1125_v63 = vsel %vm494_vm2, %v1123_v41, %v1111_v4 }
 0x7bf   : > { %v1117_v39 = vpop.permute.xlu0 %1116 }
 0x7c0   : > { %v1127_v42 = vsel %vm1126_vm3, %v1124_v12, %v1117_v39 }
 0x7c1   : > { %1129 = vst [vmem:[%s273_s17] sm:$0xff] %v1127_v42  ;;  %v1119_v2 = vpop.permute.xlu1 %1118 }
 0x7c2   : > { %v1128_v43 = vsel %vm1126_vm3, %v1125_v63, %v1119_v2 }
 0x7c3   : > { %1130 = vst [vmem:[%s273_s17 + $0x8] sm:$0xff] %v1128_v43 }
 0x7c4 PF: > { %p16_p9 = scmp.ge.s32.totalorder %s1807_s10, 4   ;;  %s2146_s18 = smov %s1660_s19 }
 0x7c5   : > { %s2147_s19 = smov %s1664_s20  ;;  %s2148_s20 = smov %s1818_s15 }
 0x7c6   : > { %s2149_s21 = smov %s1807_s10  ;;  %18 = sbr.rel (!%p16_p9) target bundleno = 4 (0x4), region = 88 }
 0x7cd   :  { %1152 = vsyncpa [#allocation3], 1 }
 0x7ce   :  { %1154 = vsyncpa [#allocation3 + $0x1], 1 }
 0x7cf   :  { %1155 = vsyncpa [#allocation5], 1 }

</bundles_post_ra>
